<compile_context>
chip_gen: v6e
topology: v6e:2x2x1
jax: 0.10.0
libtpu: 0.0.40
codegen_flags: <defaults>
</compile_context>

<pallas_src>
import jax
import jax.numpy as jnp
from jax.experimental import pallas as pl
from jax.experimental.pallas import tpu as pltpu


def _make_bbox_loss_kernel(block_rows, rows_valid, blocks_per_shard, sharded):
    """Streaming masked-SSE reduction over lane-dense (block_rows, 128) blocks.

    acc_ref: (8, 128) f32 resident accumulator (one per shard) holding
             sum(mask * (bbox_out - bbox_target)^2) over this shard's rows.
    """

    def kernel(bo_ref, bt_ref, mask_ref, acc_ref):
        if sharded:
            step = pl.program_id(1)
            global_block = pl.program_id(0) * blocks_per_shard + step
        else:
            step = pl.program_id(0)
            global_block = step

        @pl.when(step == 0)
        def _():
            acc_ref[...] = jnp.zeros_like(acc_ref)

        # Upcast in-kernel: bbox tensors may stream in as bf16/f16, mask as int8.
        bo = bo_ref[...].astype(jnp.float32)
        bt = bt_ref[...].astype(jnp.float32)
        m = mask_ref[...].astype(jnp.float32)
        diff = bo - bt
        sq = diff * diff * m

        # Ragged-tail / over-hanging-shard handling: rows at or beyond
        # `rows_valid` contain unspecified data (possibly NaN/Inf), so kill them
        # with a select on a row-index predicate (NOT a multiply, which would
        # propagate NaN * 0 = NaN).
        row_idx = (global_block * block_rows
                   + jax.lax.broadcasted_iota(jnp.int32, (block_rows, 128), 0))
        contrib = jnp.where(row_idx < rows_valid, sq, 0.0)

        # Fold the block into the resident (8,128) accumulator with pure VALU
        # adds (tile-aligned reshape; no cross-lane XLU work in the hot loop).
        acc_ref[...] += jnp.sum(contrib.reshape(block_rows // 8, 8, 128), axis=0)

    return kernel


def bbox_loss(bbox_out, bbox_target, label, keep_ratio=1.0,
              block_rows=4096, num_shards=1):
    """Pallas implementation of BBoxLoss.forward.

    bbox_out:    (N, 4) float (f32/bf16/f16 streamed natively)
    bbox_target: (N, 4) float
    label:       (N, 1) values in {-1, 0, 1}
    num_shards:  set to 2 on v7x (two TensorCores, CORE_PARALLEL split);
                 leave at 1 on single-TC chips (v5e / v6e).
    """
    if keep_ratio != 1.0:
        # TODO(synk): top-k selection for keep_ratio < 1.0 has no clean Pallas
        # equivalent; the reference module hard-codes keep_ratio = 1.0.
        raise NotImplementedError("bbox_loss only supports keep_ratio == 1.0")

    N, D = bbox_out.shape
    assert 128 % D == 0, "coord dim must divide the 128-lane vreg width"
    samples_per_row = 128 // D  # 32 samples per 128-lane row for D=4

    # Valid-sample count: exact int32, computed directly from label (cheap;
    # removes the second accumulator / mask-count stream from the kernel).
    labelf = label.astype(jnp.float32)
    valid = jnp.abs(labelf) == 1.0                       # (N, 1) bool
    keep_num = jnp.sum(valid.astype(jnp.int32))          # exact count

    # int8 mask broadcast across the D coords (shares the lane-dense layout).
    mask = jnp.broadcast_to(valid, (N, D)).astype(jnp.int8)

    # Lane-dense reshape (N, D) -> (rows, 128).  Metadata-only when N % 32 == 0;
    # otherwise pay one pad-to-32 copy (granularity 32 samples, not blocks).
    pad_n = (-N) % samples_per_row
    if pad_n:
        zp = ((0, pad_n), (0, 0))
        bbox_out = jnp.pad(bbox_out, zp)
        bbox_target = jnp.pad(bbox_target, zp)
        mask = jnp.pad(mask, zp)                          # padded samples masked
    rows = (N + pad_n) // samples_per_row

    bo = bbox_out.reshape(rows, 128)
    bt = bbox_target.reshape(rows, 128)
    mk = mask.reshape(rows, 128)

    # Block sizing.
    if rows >= block_rows:
        # Big case: fixed block, multiple of 32 (int8 sublane tiling); the
        # ragged last block is handled in-kernel (no wrapper block padding).
        block_rows = max(32, (block_rows // 32) * 32)
    else:
        # Small case: a single full-array block.  Round rows up to a sublane
        # multiple so the in-kernel (k, 8, 128) fold works; tiny copy at most.
        block_rows = ((rows + 7) // 8) * 8
        if block_rows != rows:
            rp = ((0, block_rows - rows), (0, 0))
            bo = jnp.pad(bo, rp)
            bt = jnp.pad(bt, rp)
            mk = jnp.pad(mk, rp)

    blocks_total = pl.cdiv(rows, block_rows)
    last_block = blocks_total - 1

    if num_shards > 1:
        blocks_per_shard = pl.cdiv(blocks_total, num_shards)
        grid = (num_shards, blocks_per_shard)

        def in_map(s, i):
            # Clamp so over-hanging shard steps never issue out-of-range DMAs;
            # their contribution is zeroed in-kernel via the row predicate.
            return (jnp.minimum(s * blocks_per_shard + i, last_block), 0)

        in_spec = pl.BlockSpec((block_rows, 128), in_map)
        out_spec = pl.BlockSpec((None, 8, 128), lambda s, i: (s, 0, 0))
        out_shape = jax.ShapeDtypeStruct((num_shards, 8, 128), jnp.float32)
        # CORE_PARALLEL actually shards the leading axis across TensorCores
        # (plain "parallel" barely changes codegen); row axis is the reduction.
        dims = (pltpu.CORE_PARALLEL, pltpu.ARBITRARY)
    else:
        blocks_per_shard = blocks_total
        grid = (blocks_total,)
        in_spec = pl.BlockSpec((block_rows, 128), lambda i: (i, 0))
        out_spec = pl.BlockSpec((8, 128), lambda i: (0, 0))
        out_shape = jax.ShapeDtypeStruct((8, 128), jnp.float32)
        dims = (pltpu.ARBITRARY,)

    kernel = _make_bbox_loss_kernel(block_rows, rows, blocks_per_shard,
                                    num_shards > 1)

    # VMEM budget: 3 double-buffered input blocks + the tiny resident output.
    # Note v5e's scoped-VMEM default is only 16 MiB (32 MiB on v6e/v7x): set an
    # explicit limit when the pipeline would exceed ~12 MiB, capped at 40 MiB
    # to stay comfortably under v7x's 64 MiB physical VMEM.
    block_bytes = block_rows * 128 * (bo.dtype.itemsize
                                      + bt.dtype.itemsize
                                      + mk.dtype.itemsize)
    pipelined = 2 * block_bytes + num_shards * 8 * 128 * 4
    vmem_limit = None
    if pipelined > (12 << 20):
        vmem_limit = min(int(pipelined * 3 // 2) + (2 << 20), 40 << 20)

    acc = pl.pallas_call(
        kernel,
        out_shape=out_shape,
        grid=grid,
        in_specs=[in_spec, in_spec, in_spec],
        out_specs=out_spec,
        compiler_params=pltpu.CompilerParams(
            dimension_semantics=dims,
            vmem_limit_bytes=vmem_limit,
        ),
    )(bo, bt, mk)

    masked_sum = jnp.sum(acc)
    keep = jnp.floor(keep_num.astype(jnp.float32) * keep_ratio)
    # Guard the degenerate all-invalid batch (the PyTorch reference would
    # divide by zero / mean an empty tensor -> NaN).  Documented deviation.
    keep = jnp.maximum(keep, 1.0)
    return masked_sum / keep


def _reference(bbox_out, bbox_target, label, keep_ratio=1.0):
    valid = jnp.where(jnp.abs(label[:, 0]) == 1.0, 1.0, 0.0)
    per_row = jnp.sum((bbox_out - bbox_target) ** 2, axis=1)
    masked = per_row * valid
    keep_num = jnp.floor(jnp.sum(valid) * keep_ratio)
    return jnp.sum(masked) / keep_num


if __name__ == "__main__":
    key = jax.random.PRNGKey(0)
    k1, k2, k3 = jax.random.split(key, 3)

    N, D = 256, 4
    bbox_out = jax.random.normal(k1, (N, D), dtype=jnp.float32)
    bbox_target = jax.random.normal(k2, (N, D), dtype=jnp.float32)
    # labels in {-1, 0, 1}: -1 = part, 0 = negative, 1 = positive
    label = jax.random.randint(k3, (N, 1), -1, 2).astype(jnp.float32)

    out = bbox_loss(bbox_out, bbox_target, label)
    out = jax.block_until_ready(out)

    ref = _reference(bbox_out, bbox_target, label)
    assert jnp.allclose(out, ref, rtol=1e-5, atol=1e-6), (out, ref)

    print("KERNEL_OK")
</pallas_src>

<mosaic_0001>
module attributes {stable_mosaic.version = 11 : i64} {
  func.func @kernel(%arg0: i32, %arg1: memref<8x128xf32, #tpu.memory_space<vmem>>, %arg2: memref<8x128xf32, #tpu.memory_space<vmem>>, %arg3: memref<8x128xi8, #tpu.memory_space<vmem>>, %arg4: memref<8x128xf32, #tpu.memory_space<vmem>>) attributes {dimension_semantics = [#tpu.dimension_semantics<arbitrary>], iteration_bounds = array<i64: 1>, scalar_prefetch = 0 : i64, scratch_operands = 0 : i64, tpu.core_type = #tpu.core_type<tc>, window_params = [{transform_indices = @transform_0, window_bounds = array<i64: 8, 128>}, {transform_indices = @transform_1, window_bounds = array<i64: 8, 128>}, {transform_indices = @transform_2, window_bounds = array<i64: 8, 128>}, {pipeline_mode = #tpu.pipeline_mode<synchronous>, transform_indices = @transform_3, window_bounds = array<i64: 8, 128>}]} {
    %c0_i32 = arith.constant 0 : i32
    %0 = arith.cmpi eq, %arg0, %c0_i32 : i32
    %1 = arith.extui %0 : i1 to i32
    %c0_i32_0 = arith.constant 0 : i32
    %2 = arith.cmpi ne, %1, %c0_i32_0 : i32
    scf.if %2 {
      %cst_12 = arith.constant 0.000000e+00 : f32
      %23 = vector.broadcast %cst_12 : f32 to vector<8x128xf32>
      %c0_13 = arith.constant 0 : index
      %c0_14 = arith.constant 0 : index
      %24 = vector.load %arg4[%c0_13, %c0_14] : memref<8x128xf32, #tpu.memory_space<vmem>>, vector<8x128xf32>
      tpu.vector_store %arg4[%c0_13, %c0_14], %23 {strides = array<i32>} : memref<8x128xf32, #tpu.memory_space<vmem>>, vector<8x128xf32>,
    } else {
    }
    %c0 = arith.constant 0 : index
    %c0_1 = arith.constant 0 : index
    %3 = vector.load %arg1[%c0, %c0_1] : memref<8x128xf32, #tpu.memory_space<vmem>>, vector<8x128xf32>
    %c0_2 = arith.constant 0 : index
    %c0_3 = arith.constant 0 : index
    %4 = vector.load %arg2[%c0_2, %c0_3] : memref<8x128xf32, #tpu.memory_space<vmem>>, vector<8x128xf32>
    %c0_4 = arith.constant 0 : index
    %c0_5 = arith.constant 0 : index
    %5 = vector.load %arg3[%c0_4, %c0_5] : memref<8x128xi8, #tpu.memory_space<vmem>>, vector<8x128xi8>
    %6 = arith.sitofp %5 : vector<8x128xi8> to vector<8x128xf32>
    %7 = arith.subf %3, %4 : vector<8x128xf32>
    %8 = arith.mulf %7, %7 : vector<8x128xf32>
    %9 = arith.mulf %8, %6 : vector<8x128xf32>
    %c8_i32 = arith.constant 8 : i32
    %10 = arith.muli %arg0, %c8_i32 : i32
    %11 = tpu.iota {dimensions = array<i32: 0>} : vector<8x128xi32>
    %12 = vector.broadcast %10 : i32 to vector<8x128xi32>
    %13 = arith.addi %12, %11 : vector<8x128xi32>
    %c8_i32_6 = arith.constant 8 : i32
    %14 = vector.broadcast %c8_i32_6 : i32 to vector<8x128xi32>
    %15 = arith.cmpi slt, %13, %14 : vector<8x128xi32>
    %cst = arith.constant 0.000000e+00 : f32
    %16 = vector.broadcast %cst : f32 to vector<8x128xf32>
    %17 = arith.select %15, %9, %16 : vector<8x128xi1>, vector<8x128xf32>
    %c0_7 = arith.constant 0 : index
    %c0_8 = arith.constant 0 : index
    %18 = vector.load %arg4[%c0_7, %c0_8] : memref<8x128xf32, #tpu.memory_space<vmem>>, vector<8x128xf32>
    %19 = vector.shape_cast %17 : vector<8x128xf32> to vector<1x8x128xf32>
    %cst_9 = arith.constant dense<0.000000e+00> : vector<8x128xf32>
    %20 = vector.multi_reduction <add>, %19, %cst_9 [0] : vector<1x8x128xf32> to vector<8x128xf32>
    %21 = arith.addf %18, %20 : vector<8x128xf32>
    %c0_10 = arith.constant 0 : index
    %c0_11 = arith.constant 0 : index
    %22 = vector.load %arg4[%c0_10, %c0_11] : memref<8x128xf32, #tpu.memory_space<vmem>>, vector<8x128xf32>
    tpu.vector_store %arg4[%c0_10, %c0_11], %21 {strides = array<i32>} : memref<8x128xf32, #tpu.memory_space<vmem>>, vector<8x128xf32>,
    return
  }
  func.func @transform_0(%arg0: i32) -> (i32, i32) {
    %c0_i32 = arith.constant 0 : i32
    %c0_i32_0 = arith.constant 0 : i32
    return %arg0, %c0_i32 : i32, i32
  }
  func.func @transform_1(%arg0: i32) -> (i32, i32) {
    %c0_i32 = arith.constant 0 : i32
    %c0_i32_0 = arith.constant 0 : i32
    return %arg0, %c0_i32 : i32, i32
  }
  func.func @transform_2(%arg0: i32) -> (i32, i32) {
    %c0_i32 = arith.constant 0 : i32
    %c0_i32_0 = arith.constant 0 : i32
    return %arg0, %c0_i32 : i32, i32
  }
  func.func @transform_3(%arg0: i32) -> (i32, i32) {
    %c0_i32 = arith.constant 0 : i32
    %c0_i32_0 = arith.constant 0 : i32
    %c0_i32_1 = arith.constant 0 : i32
    return %c0_i32, %c0_i32_0 : i32, i32
  }
}

</mosaic_0001>

<bundles_post_ra>
// kernel: tpu_custom_call.1
= control target key start
LH: loop header
LB: loop body
LE: loop exit
PB: predicated region body
PF: predicated region fallthrough
CT: control target
= control target key end

     0   :  { %8 = vsyncpa [#allocation3], 0  ;;  %s184_s0 = inlined_call_operand.hbm [shape: f32[8,128], index: 0, kind: input, shape index: {}]   ;;  %s185_s1 = inlined_call_operand.hbm [shape: f32[8,128], index: 1, kind: input, shape index: {}]   ;;  %s186_s2 = inlined_call_operand.vmem [shape: s8[8,128], index: 2, kind: input, shape index: {}]   ;;  %s187_s3 = inlined_call_operand.hbm [shape: f32[8,128], index: 3, kind: output, shape index: {}]  }
   0x1   :  { %9 = vsyncpa [#allocation6], 0 }
   0x2   :  { %10 = vsyncpa [#allocation4], 0  ;;  %s149_s12 = smov [#allocation2]   ;;  %s150_s14 = smov [#allocation5]  }
   0x3   :  { %s17_s13 = sshll.u32 %s149_s12, 4  ;;  %s27_s15 = sshll.u32 %s150_s14, 4  ;;  %s18_s13 = int_to_ptr.vmem [resolvable:$true] %s17_s13  ;;  %s28_s15 = int_to_ptr.vmem [resolvable:$true] %s27_s15 }
   0x4   :  { %s91_s16 = scalar_lea.vmem %s18_s13, 128  ;;  %p96_p1 = scmp.lt.s32.totalorder %s18_s13, %s18_s13 }
   0x5   :  { %p92_p0 = scmp.ne.s32.totalorder %s18_s13, %s91_s16  ;;  %p97_p2 = scmp.lt.s32.totalorder %s91_s16, %s91_s16 }
   0x7   :  { %p98_p3 = por %p97_p2, %p96_p1 }
   0x9   :  { %p99_p4 = pnand %p98_p3, %p92_p0 }
   0xb   :  { %102 = shalt.err (!%p99_p4)
}
   0xc   :  { %20 = dma.hbm_to_vmem [thread:$0]  %s184_s0, 128, %s18_s13, [#allocation3]  }
   0xd   :  { %s111_s19 = scalar_lea.vmem %s28_s15, 128  ;;  %p116_p6 = scmp.lt.s32.totalorder %s28_s15, %s28_s15 }
   0xe   :  { %p112_p5 = scmp.ne.s32.totalorder %s28_s15, %s111_s19  ;;  %p117_p7 = scmp.lt.s32.totalorder %s111_s19, %s111_s19 }
  0x10   :  { %p118_p8 = por %p117_p7, %p116_p6 }
  0x12   :  { %p119_p9 = pnand %p118_p8, %p112_p5 }
  0x14   :  { %122 = shalt.err (!%p119_p9)
}
  0x15   :  { %30 = dma.hbm_to_vmem [thread:$0]  %s185_s1, 128, %s28_s15, [#allocation6]  }
  0x16   :  { %143 = dma.done.wait [#allocation3], 128  }
  0x17   :  { %144 = vsyncadd [#allocation3], 4294967168 }
  0x18   :  { %145 = dma.done.wait [#allocation6], 128  }
  0x19   :  { %146 = vsyncadd [#allocation6], 4294967168  ;;  %v44_v0 = vld [vmem:[#allocation2] sm:$0xff]  ;;  %v45_v1 = vld [vmem:[#allocation5] sm:$0xff]  ;;  %s151_s0 = smov [#allocation7]  }
  0x1a   :  { %v46_v2 = vld [vmem:[%s186_s2] sm:$0x3]  ;;  %v49_v4 = vsub.f32 %v44_v0, %v45_v1  ;;  %s69_s24 = sshll.u32 %s151_s0, 4  ;;  %s70_s24 = int_to_ptr.vmem [resolvable:$true] %s69_s24 }
  0x1b   :  { %v47_v3 = vunpack.c.0.s8 %v46_v2  ;;  %s123_s1 = scalar_lea.vmem %s70_s24, 128  ;;  %p128_p11 = scmp.lt.s32.totalorder %s70_s24, %s70_s24 }
  0x1c   :  { %v50_v6 = vmul.f32 %v49_v4, %v49_v4  ;;  %p124_p10 = scmp.ne.s32.totalorder %s70_s24, %s123_s1  ;;  %p129_p12 = scmp.lt.s32.totalorder %s123_s1, %s123_s1 }
  0x1d   :  { %v48_v5 = vcvt.s32.f32 %v47_v3 }
  0x1e   :  { %p130_p13 = por %p129_p12, %p128_p11 }
  0x1f   :  { %v51_v7 = vmul.f32 %v50_v6, %v48_v5 }
  0x20   :  { %p131_p0 = pnand %p130_p13, %p124_p10 }
  0x21   :  { %62 = vst [vmem:[#allocation7] sm:$0xff] %v51_v7 }
  0x22   :  { %134 = shalt.err (!%p131_p0)
}
  0x23   :  { %72 = dma.vmem_to_hbm [thread:$0]  %s70_s24, 128, %s187_s3, [#allocation4]  }
  0x24   :  { %147 = dma.done.wait [#allocation4], 128  }
  0x25   :  { %148 = vsyncadd [#allocation4], 4294967168 }
  0x26   :  { %76 = vsyncpa [#allocation3], 1 }
  0x27   :  { %77 = vsyncpa [#allocation6], 1 }
  0x28   :  { %78 = vsyncpa [#allocation4], 1 }

</bundles_post_ra>
